<compile_context>
chip_gen: v5e
topology: v5e:2x2
jax: 0.10.0
libtpu: 0.0.40
codegen_flags: <defaults>
</compile_context>

<pallas_src>
import functools

import jax
import jax.numpy as jnp
import numpy as np
from jax.experimental import pallas as pl
from jax.experimental.pallas import tpu as pltpu


def _round_up(v, m):
    return ((v + m - 1) // m) * m


# ----------------------------------------------------------------------------
# Fused kernel: tree1 (conv+bn+relu) -> tree2 (conv+bn+relu) -> Root (1x1 conv
# over channel-concat + bn + relu).  Channels-first [C, B*L] layout, batch
# packed into lanes.  No scratch: all intermediates live in vregs.
# ----------------------------------------------------------------------------
def _tree_fused_kernel(x_ref, m_ref, w1_ref, w2_ref, wr_ref, sh_ref, o_ref):
    f32 = jnp.float32
    x = x_ref[...].astype(f32)           # [Cin_p, LP], batch segments along lanes
    mL = m_ref[0].astype(f32)            # [1, LP] keep-mask: 0 where lane%L == 0
    mR = m_ref[1].astype(f32)            # [1, LP] keep-mask: 0 where lane%L == L-1
    LP = x.shape[-1]

    def taps(v):
        # 'same'-padding +/-1 temporal taps: XLU lane roll + boundary mask
        # (the mask also stops leakage across packed batch segments / padding).
        left = pltpu.roll(v, shift=1, axis=1) * mL        # y[:, p] = v[:, p-1]
        right = pltpu.roll(v, shift=LP - 1, axis=1) * mR  # y[:, p] = v[:, p+1]
        return left, right

    def conv3_bn_relu(v, w_ref, sh):
        # Conv1d(k=3, pad=1, no bias) + BN(eval, folded) + ReLU as three
        # register-accumulated MXU dots (tap order matches PyTorch k=0,1,2).
        left, right = taps(v)
        acc = jnp.dot(w_ref[0], left, preferred_element_type=f32)
        acc = acc + jnp.dot(w_ref[1], v, preferred_element_type=f32)
        acc = acc + jnp.dot(w_ref[2], right, preferred_element_type=f32)
        return jnp.maximum(acc + sh, 0.0)

    x1 = conv3_bn_relu(x, w1_ref, sh_ref[0])      # tree1: [Cout_p, LP]
    x2 = conv3_bn_relu(x1, w2_ref, sh_ref[1])     # tree2: [Cout_p, LP]

    # Root: ReLU(BN(Conv1d_k1(cat([x2, x1], C)))) == ReLU(WrA@x2 + WrB@x1 + b)
    y = jnp.dot(wr_ref[0], x2, preferred_element_type=f32)
    y = y + jnp.dot(wr_ref[1], x1, preferred_element_type=f32)
    o_ref[...] = jnp.maximum(y + sh_ref[2], 0.0).astype(o_ref.dtype)


# ----------------------------------------------------------------------------
# Wrapper: trace-time BN folding / weight reshaping / lane packing.
# ----------------------------------------------------------------------------
@jax.jit
def tree_forward(x, w1, w2, wr, bn1, bn2, bnr):
    """Tree(levels=1, level_root=False, root_residual=False) forward.

    x  : [B, Cin, L]       (PyTorch NCL layout)
    w1 : [Cout, Cin,  3]   tree1 block conv weight (k=3, pad=1, no bias)
    w2 : [Cout, Cout, 3]   tree2 block conv weight
    wr : [Cout, 2*Cout, 1] Root 1x1 conv weight (conv_)
    bn*: (gamma, beta, running_mean, running_var), each [Cout], eval mode.
    returns [B, Cout, L]
    """
    B, Cin, L = x.shape
    Cout, _, K = w1.shape
    assert K == 3 and wr.shape[2] == 1
    eps = 1e-5

    Cin_p = _round_up(Cin, 8)
    Cout_p = _round_up(Cout, 8)
    BL = B * L
    LP = _round_up(BL, 128)          # lane-dense: batch packed into 128 lanes

    def fold(bn):
        gamma, beta, mean, var = bn
        s = gamma / jnp.sqrt(var + eps)
        return s, beta - mean * s

    s1, b1 = fold(bn1)
    s2, b2 = fold(bn2)
    sr, br = fold(bnr)

    # Tap-major conv weights with BN scale folded in, zero-padded to 8-aligned
    # channel counts.  w*p[k] is the [Cout_p, C_p] matrix of tap k
    # (k=0 -> x[l-1], k=1 -> x[l], k=2 -> x[l+1]), matching PyTorch Conv1d.
    def prep_k3(w, s, C_p):
        ws = w * s[:, None, None]                           # [Cout, C, 3]
        wt = jnp.transpose(ws, (2, 0, 1))                   # [3, Cout, C]
        return jnp.pad(wt, ((0, 0), (0, Cout_p - Cout),
                            (0, C_p - wt.shape[2]))).astype(jnp.float32)

    w1p = prep_k3(w1, s1, Cin_p)                            # [3, Cout_p, Cin_p]
    w2p = prep_k3(w2, s2, Cout_p)                           # [3, Cout_p, Cout_p]

    wrs = wr[:, :, 0] * sr[:, None]                         # [Cout, 2*Cout]
    wrp = jnp.stack([wrs[:, :Cout], wrs[:, Cout:]], 0)      # [2, Cout, Cout]
    wrp = jnp.pad(wrp, ((0, 0), (0, Cout_p - Cout),
                        (0, Cout_p - Cout))).astype(jnp.float32)

    sh = jnp.stack([b1, b2, br], 0)                         # [3, Cout]
    shp = jnp.pad(sh, ((0, 0), (0, Cout_p - Cout)))[:, :, None].astype(jnp.float32)

    # Batch packed into lanes: [B, Cin, L] -> [Cin_p, LP] (zero pad tail).
    xp = jnp.transpose(x, (1, 0, 2)).reshape(Cin, BL)
    xp = jnp.pad(xp, ((0, Cin_p - Cin), (0, LP - BL))).astype(jnp.float32)

    # Hoisted batch-segment boundary keep-masks (compile-time constants).
    pos = jnp.arange(LP, dtype=jnp.int32) % L
    masks = jnp.stack([(pos != 0), (pos != L - 1)], 0)[:, None, :]
    masks = masks.astype(jnp.float32)                       # [2, 1, LP]

    out = pl.pallas_call(
        _tree_fused_kernel,
        out_shape=jax.ShapeDtypeStruct((Cout_p, LP), jnp.float32),
        grid=(1,),
        in_specs=[
            pl.BlockSpec((Cin_p, LP), lambda i: (0, 0)),
            pl.BlockSpec((2, 1, LP), lambda i: (0, 0, 0)),
            pl.BlockSpec((3, Cout_p, Cin_p), lambda i: (0, 0, 0)),
            pl.BlockSpec((3, Cout_p, Cout_p), lambda i: (0, 0, 0)),
            pl.BlockSpec((2, Cout_p, Cout_p), lambda i: (0, 0, 0)),
            pl.BlockSpec((3, Cout_p, 1), lambda i: (0, 0, 0)),
        ],
        out_specs=pl.BlockSpec((Cout_p, LP), lambda i: (0, 0)),
        compiler_params=pltpu.CompilerParams(
            dimension_semantics=("arbitrary",)),
    )(xp, masks, w1p, w2p, wrp, shp)

    # Unpack lanes back to the PyTorch NCL layout (cheap layout plumbing).
    out = out[:Cout, :BL].reshape(Cout, B, L)
    return jnp.transpose(out, (1, 0, 2)).astype(x.dtype)


# ----------------------------------------------------------------------------
# Plain-JAX reference (same math, PyTorch-layout params) for a sanity check.
# ----------------------------------------------------------------------------
def _ref_conv1d_same(x, w):
    # x: [B, C, L], w: [Cout, Cin, K], stride 1, padding (K-1)//2, no bias.
    L = x.shape[2]
    K = w.shape[2]
    pad_lo = (K - 1) // 2
    xp = jnp.pad(x, ((0, 0), (0, 0), (pad_lo, K - 1 - pad_lo)))
    return sum(jnp.einsum('bcl,oc->bol', xp[:, :, k:k + L], w[:, :, k])
               for k in range(K))


def _ref_bn_eval(x, bn, eps=1e-5):
    gamma, beta, mean, var = bn
    s = gamma / jnp.sqrt(var + eps)
    return x * s[None, :, None] + (beta - mean * s)[None, :, None]


def _ref_tree(x, w1, w2, wr, bn1, bn2, bnr):
    x1 = jax.nn.relu(_ref_bn_eval(_ref_conv1d_same(x, w1), bn1))
    x2 = jax.nn.relu(_ref_bn_eval(_ref_conv1d_same(x1, w2), bn2))
    cat = jnp.concatenate([x2, x1], axis=1)
    return jax.nn.relu(_ref_bn_eval(_ref_conv1d_same(cat, wr), bnr))


if __name__ == "__main__":
    B, Cin, Cout, L, K = 2, 4, 8, 16, 3

    key = jax.random.PRNGKey(0)
    ks = jax.random.split(key, 8)

    # PyTorch-layout parameters, deterministic init.
    w1 = jax.random.normal(ks[0], (Cout, Cin, K), jnp.float32) / np.sqrt(Cin * K)
    w2 = jax.random.normal(ks[1], (Cout, Cout, K), jnp.float32) / np.sqrt(Cout * K)
    wr = jax.random.normal(ks[2], (Cout, 2 * Cout, 1), jnp.float32) / np.sqrt(2 * Cout)

    def make_bn(k):
        kg, kb, km, kv = jax.random.split(k, 4)
        gamma = 1.0 + 0.1 * jax.random.normal(kg, (Cout,), jnp.float32)
        beta = 0.1 * jax.random.normal(kb, (Cout,), jnp.float32)
        mean = 0.1 * jax.random.normal(km, (Cout,), jnp.float32)
        var = 1.0 + 0.1 * jax.random.uniform(kv, (Cout,), jnp.float32)
        return (gamma, beta, mean, var)

    bn1, bn2, bnr = make_bn(ks[3]), make_bn(ks[4]), make_bn(ks[5])
    x = jax.random.normal(ks[6], (B, Cin, L), jnp.float32)   # PyTorch NCL input

    out = tree_forward(x, w1, w2, wr, bn1, bn2, bnr)
    out = jax.block_until_ready(out)
    assert out.shape == (B, Cout, L)

    ref = _ref_tree(x, w1, w2, wr, bn1, bn2, bnr)
    np.testing.assert_allclose(np.asarray(out), np.asarray(ref),
                               rtol=1e-4, atol=1e-4)

    print("KERNEL_OK")
</pallas_src>

<mosaic_0001>
module attributes {stable_mosaic.version = 11 : i64} {
  func.func @_tree_fused_kernel(%arg0: i32, %arg1: memref<8x128xf32, #tpu.memory_space<vmem>>, %arg2: memref<2x1x128xf32, #tpu.memory_space<vmem>>, %arg3: memref<3x8x8xf32, #tpu.memory_space<vmem>>, %arg4: memref<3x8x8xf32, #tpu.memory_space<vmem>>, %arg5: memref<2x8x8xf32, #tpu.memory_space<vmem>>, %arg6: memref<3x8x1xf32, #tpu.memory_space<vmem>>, %arg7: memref<8x128xf32, #tpu.memory_space<vmem>>) attributes {dimension_semantics = [#tpu.dimension_semantics<arbitrary>], iteration_bounds = array<i64: 1>, scalar_prefetch = 0 : i64, scratch_operands = 0 : i64, tpu.core_type = #tpu.core_type<tc>, window_params = [{pipeline_mode = #tpu.pipeline_mode<synchronous>, transform_indices = @transform_0, window_bounds = array<i64: 8, 128>}, {pipeline_mode = #tpu.pipeline_mode<synchronous>, transform_indices = @transform_1, window_bounds = array<i64: 2, 1, 128>}, {pipeline_mode = #tpu.pipeline_mode<synchronous>, transform_indices = @transform_2, window_bounds = array<i64: 3, 8, 8>}, {pipeline_mode = #tpu.pipeline_mode<synchronous>, transform_indices = @transform_3, window_bounds = array<i64: 3, 8, 8>}, {pipeline_mode = #tpu.pipeline_mode<synchronous>, transform_indices = @transform_4, window_bounds = array<i64: 2, 8, 8>}, {pipeline_mode = #tpu.pipeline_mode<synchronous>, transform_indices = @transform_5, window_bounds = array<i64: 3, 8, 1>}, {pipeline_mode = #tpu.pipeline_mode<synchronous>, transform_indices = @transform_6, window_bounds = array<i64: 8, 128>}]} {
    %c0 = arith.constant 0 : index
    %c0_0 = arith.constant 0 : index
    %0 = vector.load %arg1[%c0, %c0_0] : memref<8x128xf32, #tpu.memory_space<vmem>>, vector<8x128xf32>
    %c0_1 = arith.constant 0 : index
    %c0_2 = arith.constant 0 : index
    %c0_3 = arith.constant 0 : index
    %1 = vector.load %arg2[%c0_1, %c0_2, %c0_3] : memref<2x1x128xf32, #tpu.memory_space<vmem>>, vector<1x1x128xf32>
    %2 = vector.shape_cast %1 : vector<1x1x128xf32> to vector<1x128xf32>
    %c1 = arith.constant 1 : index
    %c0_4 = arith.constant 0 : index
    %c0_5 = arith.constant 0 : index
    %3 = vector.load %arg2[%c1, %c0_4, %c0_5] : memref<2x1x128xf32, #tpu.memory_space<vmem>>, vector<1x1x128xf32>
    %4 = vector.shape_cast %3 : vector<1x1x128xf32> to vector<1x128xf32>
    %c0_6 = arith.constant 0 : index
    %c0_7 = arith.constant 0 : index
    %c0_8 = arith.constant 0 : index
    %5 = vector.load %arg6[%c0_6, %c0_7, %c0_8] : memref<3x8x1xf32, #tpu.memory_space<vmem>>, vector<1x8x1xf32>
    %6 = vector.shape_cast %5 : vector<1x8x1xf32> to vector<8x1xf32>
    %c1_i32 = arith.constant 1 : i32
    %7 = tpu.dynamic_rotate %0 by %c1_i32 dim 1 : vector<8x128xf32>, i32 -> vector<8x128xf32>
    %8 = vector.broadcast %2 : vector<1x128xf32> to vector<8x128xf32>
    %9 = arith.mulf %7, %8 : vector<8x128xf32>
    %c127_i32 = arith.constant 127 : i32
    %10 = tpu.dynamic_rotate %0 by %c127_i32 dim 1 : vector<8x128xf32>, i32 -> vector<8x128xf32>
    %11 = vector.broadcast %4 : vector<1x128xf32> to vector<8x128xf32>
    %12 = arith.mulf %10, %11 : vector<8x128xf32>
    %c0_9 = arith.constant 0 : index
    %c0_10 = arith.constant 0 : index
    %c0_11 = arith.constant 0 : index
    %13 = vector.load %arg3[%c0_9, %c0_10, %c0_11] : memref<3x8x8xf32, #tpu.memory_space<vmem>>, vector<1x8x8xf32>
    %14 = vector.shape_cast %13 : vector<1x8x8xf32> to vector<8x8xf32>
    %cst = arith.constant dense<0.000000e+00> : vector<8x128xf32>
    %15 = tpu.matmul %14, %9, %cst {dimension_numbers = #tpu.dot_dimension_numbers<[1], [0], [0], [1], [0, 0, 1, 1], [], []>} : vector<8x8xf32>, vector<8x128xf32>, vector<8x128xf32> -> vector<8x128xf32>
    %c1_12 = arith.constant 1 : index
    %c0_13 = arith.constant 0 : index
    %c0_14 = arith.constant 0 : index
    %16 = vector.load %arg3[%c1_12, %c0_13, %c0_14] : memref<3x8x8xf32, #tpu.memory_space<vmem>>, vector<1x8x8xf32>
    %17 = vector.shape_cast %16 : vector<1x8x8xf32> to vector<8x8xf32>
    %cst_15 = arith.constant dense<0.000000e+00> : vector<8x128xf32>
    %18 = tpu.matmul %17, %0, %cst_15 {dimension_numbers = #tpu.dot_dimension_numbers<[1], [0], [0], [1], [0, 0, 1, 1], [], []>} : vector<8x8xf32>, vector<8x128xf32>, vector<8x128xf32> -> vector<8x128xf32>
    %19 = arith.addf %15, %18 : vector<8x128xf32>
    %c2 = arith.constant 2 : index
    %c0_16 = arith.constant 0 : index
    %c0_17 = arith.constant 0 : index
    %20 = vector.load %arg3[%c2, %c0_16, %c0_17] : memref<3x8x8xf32, #tpu.memory_space<vmem>>, vector<1x8x8xf32>
    %21 = vector.shape_cast %20 : vector<1x8x8xf32> to vector<8x8xf32>
    %cst_18 = arith.constant dense<0.000000e+00> : vector<8x128xf32>
    %22 = tpu.matmul %21, %12, %cst_18 {dimension_numbers = #tpu.dot_dimension_numbers<[1], [0], [0], [1], [0, 0, 1, 1], [], []>} : vector<8x8xf32>, vector<8x128xf32>, vector<8x128xf32> -> vector<8x128xf32>
    %23 = arith.addf %19, %22 : vector<8x128xf32>
    %24 = vector.broadcast %6 : vector<8x1xf32> to vector<8x128xf32>
    %25 = arith.addf %23, %24 : vector<8x128xf32>
    %cst_19 = arith.constant 0.000000e+00 : f32
    %26 = vector.broadcast %cst_19 : f32 to vector<8x128xf32>
    %27 = arith.maximumf %25, %26 : vector<8x128xf32>
    %c1_20 = arith.constant 1 : index
    %c0_21 = arith.constant 0 : index
    %c0_22 = arith.constant 0 : index
    %28 = vector.load %arg6[%c1_20, %c0_21, %c0_22] : memref<3x8x1xf32, #tpu.memory_space<vmem>>, vector<1x8x1xf32>
    %29 = vector.shape_cast %28 : vector<1x8x1xf32> to vector<8x1xf32>
    %c1_i32_23 = arith.constant 1 : i32
    %30 = tpu.dynamic_rotate %27 by %c1_i32_23 dim 1 : vector<8x128xf32>, i32 -> vector<8x128xf32>
    %31 = vector.broadcast %2 : vector<1x128xf32> to vector<8x128xf32>
    %32 = arith.mulf %30, %31 : vector<8x128xf32>
    %c127_i32_24 = arith.constant 127 : i32
    %33 = tpu.dynamic_rotate %27 by %c127_i32_24 dim 1 : vector<8x128xf32>, i32 -> vector<8x128xf32>
    %34 = vector.broadcast %4 : vector<1x128xf32> to vector<8x128xf32>
    %35 = arith.mulf %33, %34 : vector<8x128xf32>
    %c0_25 = arith.constant 0 : index
    %c0_26 = arith.constant 0 : index
    %c0_27 = arith.constant 0 : index
    %36 = vector.load %arg4[%c0_25, %c0_26, %c0_27] : memref<3x8x8xf32, #tpu.memory_space<vmem>>, vector<1x8x8xf32>
    %37 = vector.shape_cast %36 : vector<1x8x8xf32> to vector<8x8xf32>
    %cst_28 = arith.constant dense<0.000000e+00> : vector<8x128xf32>
    %38 = tpu.matmul %37, %32, %cst_28 {dimension_numbers = #tpu.dot_dimension_numbers<[1], [0], [0], [1], [0, 0, 1, 1], [], []>} : vector<8x8xf32>, vector<8x128xf32>, vector<8x128xf32> -> vector<8x128xf32>
    %c1_29 = arith.constant 1 : index
    %c0_30 = arith.constant 0 : index
    %c0_31 = arith.constant 0 : index
    %39 = vector.load %arg4[%c1_29, %c0_30, %c0_31] : memref<3x8x8xf32, #tpu.memory_space<vmem>>, vector<1x8x8xf32>
    %40 = vector.shape_cast %39 : vector<1x8x8xf32> to vector<8x8xf32>
    %cst_32 = arith.constant dense<0.000000e+00> : vector<8x128xf32>
    %41 = tpu.matmul %40, %27, %cst_32 {dimension_numbers = #tpu.dot_dimension_numbers<[1], [0], [0], [1], [0, 0, 1, 1], [], []>} : vector<8x8xf32>, vector<8x128xf32>, vector<8x128xf32> -> vector<8x128xf32>
    %42 = arith.addf %38, %41 : vector<8x128xf32>
    %c2_33 = arith.constant 2 : index
    %c0_34 = arith.constant 0 : index
    %c0_35 = arith.constant 0 : index
    %43 = vector.load %arg4[%c2_33, %c0_34, %c0_35] : memref<3x8x8xf32, #tpu.memory_space<vmem>>, vector<1x8x8xf32>
    %44 = vector.shape_cast %43 : vector<1x8x8xf32> to vector<8x8xf32>
    %cst_36 = arith.constant dense<0.000000e+00> : vector<8x128xf32>
    %45 = tpu.matmul %44, %35, %cst_36 {dimension_numbers = #tpu.dot_dimension_numbers<[1], [0], [0], [1], [0, 0, 1, 1], [], []>} : vector<8x8xf32>, vector<8x128xf32>, vector<8x128xf32> -> vector<8x128xf32>
    %46 = arith.addf %42, %45 : vector<8x128xf32>
    %47 = vector.broadcast %29 : vector<8x1xf32> to vector<8x128xf32>
    %48 = arith.addf %46, %47 : vector<8x128xf32>
    %cst_37 = arith.constant 0.000000e+00 : f32
    %49 = vector.broadcast %cst_37 : f32 to vector<8x128xf32>
    %50 = arith.maximumf %48, %49 : vector<8x128xf32>
    %c0_38 = arith.constant 0 : index
    %c0_39 = arith.constant 0 : index
    %c0_40 = arith.constant 0 : index
    %51 = vector.load %arg5[%c0_38, %c0_39, %c0_40] : memref<2x8x8xf32, #tpu.memory_space<vmem>>, vector<1x8x8xf32>
    %52 = vector.shape_cast %51 : vector<1x8x8xf32> to vector<8x8xf32>
    %cst_41 = arith.constant dense<0.000000e+00> : vector<8x128xf32>
    %53 = tpu.matmul %52, %50, %cst_41 {dimension_numbers = #tpu.dot_dimension_numbers<[1], [0], [0], [1], [0, 0, 1, 1], [], []>} : vector<8x8xf32>, vector<8x128xf32>, vector<8x128xf32> -> vector<8x128xf32>
    %c1_42 = arith.constant 1 : index
    %c0_43 = arith.constant 0 : index
    %c0_44 = arith.constant 0 : index
    %54 = vector.load %arg5[%c1_42, %c0_43, %c0_44] : memref<2x8x8xf32, #tpu.memory_space<vmem>>, vector<1x8x8xf32>
    %55 = vector.shape_cast %54 : vector<1x8x8xf32> to vector<8x8xf32>
    %cst_45 = arith.constant dense<0.000000e+00> : vector<8x128xf32>
    %56 = tpu.matmul %55, %27, %cst_45 {dimension_numbers = #tpu.dot_dimension_numbers<[1], [0], [0], [1], [0, 0, 1, 1], [], []>} : vector<8x8xf32>, vector<8x128xf32>, vector<8x128xf32> -> vector<8x128xf32>
    %57 = arith.addf %53, %56 : vector<8x128xf32>
    %c2_46 = arith.constant 2 : index
    %c0_47 = arith.constant 0 : index
    %c0_48 = arith.constant 0 : index
    %58 = vector.load %arg6[%c2_46, %c0_47, %c0_48] : memref<3x8x1xf32, #tpu.memory_space<vmem>>, vector<1x8x1xf32>
    %59 = vector.shape_cast %58 : vector<1x8x1xf32> to vector<8x1xf32>
    %60 = vector.broadcast %59 : vector<8x1xf32> to vector<8x128xf32>
    %61 = arith.addf %57, %60 : vector<8x128xf32>
    %cst_49 = arith.constant 0.000000e+00 : f32
    %62 = vector.broadcast %cst_49 : f32 to vector<8x128xf32>
    %63 = arith.maximumf %61, %62 : vector<8x128xf32>
    %c0_50 = arith.constant 0 : index
    %c0_51 = arith.constant 0 : index
    %64 = vector.load %arg7[%c0_50, %c0_51] : memref<8x128xf32, #tpu.memory_space<vmem>>, vector<8x128xf32>
    tpu.vector_store %arg7[%c0_50, %c0_51], %63 {strides = array<i32>} : memref<8x128xf32, #tpu.memory_space<vmem>>, vector<8x128xf32>,
    return
  }
  func.func @transform_0(%arg0: i32) -> (i32, i32) {
    %c0_i32 = arith.constant 0 : i32
    %c0_i32_0 = arith.constant 0 : i32
    %c0_i32_1 = arith.constant 0 : i32
    return %c0_i32, %c0_i32_0 : i32, i32
  }
  func.func @transform_1(%arg0: i32) -> (i32, i32, i32) {
    %c0_i32 = arith.constant 0 : i32
    %c0_i32_0 = arith.constant 0 : i32
    %c0_i32_1 = arith.constant 0 : i32
    %c0_i32_2 = arith.constant 0 : i32
    return %c0_i32, %c0_i32_0, %c0_i32_1 : i32, i32, i32
  }
  func.func @transform_2(%arg0: i32) -> (i32, i32, i32) {
    %c0_i32 = arith.constant 0 : i32
    %c0_i32_0 = arith.constant 0 : i32
    %c0_i32_1 = arith.constant 0 : i32
    %c0_i32_2 = arith.constant 0 : i32
    return %c0_i32, %c0_i32_0, %c0_i32_1 : i32, i32, i32
  }
  func.func @transform_3(%arg0: i32) -> (i32, i32, i32) {
    %c0_i32 = arith.constant 0 : i32
    %c0_i32_0 = arith.constant 0 : i32
    %c0_i32_1 = arith.constant 0 : i32
    %c0_i32_2 = arith.constant 0 : i32
    return %c0_i32, %c0_i32_0, %c0_i32_1 : i32, i32, i32
  }
  func.func @transform_4(%arg0: i32) -> (i32, i32, i32) {
    %c0_i32 = arith.constant 0 : i32
    %c0_i32_0 = arith.constant 0 : i32
    %c0_i32_1 = arith.constant 0 : i32
    %c0_i32_2 = arith.constant 0 : i32
    return %c0_i32, %c0_i32_0, %c0_i32_1 : i32, i32, i32
  }
  func.func @transform_5(%arg0: i32) -> (i32, i32, i32) {
    %c0_i32 = arith.constant 0 : i32
    %c0_i32_0 = arith.constant 0 : i32
    %c0_i32_1 = arith.constant 0 : i32
    %c0_i32_2 = arith.constant 0 : i32
    return %c0_i32, %c0_i32_0, %c0_i32_1 : i32, i32, i32
  }
  func.func @transform_6(%arg0: i32) -> (i32, i32) {
    %c0_i32 = arith.constant 0 : i32
    %c0_i32_0 = arith.constant 0 : i32
    %c0_i32_1 = arith.constant 0 : i32
    return %c0_i32, %c0_i32_0 : i32, i32
  }
}

</mosaic_0001>

<bundles_post_ra>
// kernel: tree_forward.1
= control target key start
LH: loop header
LB: loop body
LE: loop exit
PB: predicated region body
PF: predicated region fallthrough
CT: control target
= control target key end

     0   :  { %s300_s23 = smov 127   ;;  %s301_s24 = smov 1   ;;  %vm43_vm0 = vcmask 64512   ;;  %v302_v3 = vmov 0   ;;  %s395_s0 = inlined_call_operand.vmem [shape: f32[8,128], index: 0, kind: input, shape index: {}]   ;;  %s396_s1 = inlined_call_operand.vmem [shape: f32[2,1,128], index: 1, kind: input, shape index: {}]   ;;  %s397_s5 = inlined_call_operand.vmem [shape: f32[3,8,1], index: 5, kind: input, shape index: {}]   ;;  %s398_s2 = inlined_call_operand.vmem [shape: f32[3,8,8], index: 2, kind: input, shape index: {}]   ;;  %s399_s3 = inlined_call_operand.vmem [shape: f32[3,8,8], index: 3, kind: input, shape index: {}]   ;;  %s400_s4 = inlined_call_operand.vmem [shape: f32[2,8,8], index: 4, kind: input, shape index: {}]   ;;  %s401_s6 = inlined_call_operand.vmem [shape: f32[8,128], index: 6, kind: output, shape index: {}]  }
   0x1   :  { %v23_v0 = vld [vmem:[%s395_s0] sm:$0xff]  ;;  %v277_v1 = vld [vmem:[%s398_s2 + $0x8] sm:$0xff]  ;;  %295 = vset.pattern.permute.xlu1 %v302_v3  ;;  %296 = vset.pattern.permute.xlu2 %v302_v3  ;;  %v280_v7 = vld [vmem:[%s398_s2 + $0x10] sm:$0xff] }
   0x2   :  { %34 = vrot.lane.b32.xlu0 %v23_v0, %s300_s23  ;;  %62 = vmatpush.msra.mxu0 %v23_v0  ;;  %v27_v2 = vld [vmem:[%s397_s5] sm:$0xff]  ;;  %v283_v20 = vld [vmem:[%s399_s3 + $0x8] sm:$0xff]  ;;  %v286_v24 = vld [vmem:[%s399_s3 + $0x10] sm:$0xff] }
   0x3   :  { %278 = vmatmul.msk.f32.vlgmr.msra.gmra.mxu0 %vm43_vm0, %v277_v1  ;;  %118 = vperm.xlu1 %295, %v27_v2   ;;  %v298_v4 = vld [vmem:[%s396_s1 + $0x1] ss:$0 sm:$0xff]  ;;  %v299_v8 = vld [vmem:[%s396_s1] ss:$0 sm:$0xff]  ;;  %v282_v21 = vld [vmem:[%s397_s5 + $0x8] sm:$0xff] }
   0x4   :  { %297 = vset.pattern.permute.xlu0 %v302_v3  ;;  %v40_v11 = vld [vmem:[%s398_s2] sm:$0xff]  ;;  %v288_v28 = vld [vmem:[%s400_s4 + $0x8] sm:$0xff]  ;;  %v291_v29 = vld [vmem:[%s397_s5 + $0x10] sm:$0xff] }
   0x5   :  { %v131_v27 = vld [vmem:[%s399_s3] sm:$0xff] }
   0x6   :  { %v213_v38 = vld [vmem:[%s400_s4] sm:$0xff] }
   0xa   :  { %28 = vrot.lane.b32.xlu0 %v23_v0, %s301_s24 }
  0x12   :  { %266 = vperm.xlu0 %297, %v291_v29  }
  0x74   :  { %v35_v5 = vpop.permute.xlu0 %34 }
  0x75   :  { %v39_v6 = vmul.f32 %v298_v4, %v35_v5  ;;  %v119_v16 = vpop.permute.xlu1 %118 }
  0x77   :  { %110 = vmatpush.msra.mxu2 %v39_v6 }
  0x78   :  { %281 = vmatmul.msk.f32.vlgmr.msra.gmra.mxu2 %vm43_vm0, %v280_v7 }
  0x7c   :  { %v29_v9 = vpop.permute.xlu0 %28 }
  0x7d   :  { %v33_v10 = vmul.f32 %v299_v8, %v29_v9 }
  0x7f   :  { %85 = vmatpush.msra.mxu1 %v33_v10 }
  0x80   :  { %279 = vmatmul.msk.f32.vlgmr.msra.gmra.mxu1 %vm43_vm0, %v40_v11  ;;  %v64_v12 = vpop.f32.mrf.mxu0 }
  0x84   :  { %v267_v41 = vpop.permute.xlu0 %266 }
  0xfb   :  { %v112_v14 = vpop.f32.mrf.mxu2 }
  0xfd   :  { %v87_v13 = vpop.f32.mrf.mxu1 }
  0xfe   :  { %v88_v15 = vadd.f32 %v87_v13, %v64_v12 }
 0x100   :  { %v115_v17 = vadd.f32 %v112_v14, %v88_v15 }
 0x102   :  { %v121_v18 = vadd.f32 %v119_v16, %v115_v17 }
 0x104   :  { %v122_v19 = vmax.f32 %v121_v18, 0.0 }
 0x106   :  { %128 = vrot.lane.b32.xlu2 %v122_v19, %s300_s23  ;;  %125 = vrot.lane.b32.xlu1 %v122_v19, %s301_s24 }
 0x107   :  { %152 = vmatpush.msra.mxu3 %v122_v19  ;;  %234 = vmatpush.msrb.mxu2 %v122_v19 }
 0x108   :  { %284 = vmatmul.msk.f32.vlgmr.msra.gmra.mxu3 %vm43_vm0, %v283_v20  ;;  %289 = vmatmul.msk.f32.vlgmr.msrb.gmra.mxu2 %vm43_vm0, %v288_v28 }
 0x10e   :  { %208 = vperm.xlu2 %296, %v282_v21  }
 0x160   :  { %v129_v22 = vpop.permute.xlu2 %128 }
 0x161   :  { %v130_v23 = vmul.f32 %v298_v4, %v129_v22 }
 0x163   :  { %200 = vmatpush.msrb.mxu1 %v130_v23 }
 0x164   :  { %287 = vmatmul.msk.f32.vlgmr.msrb.gmra.mxu1 %vm43_vm0, %v286_v24 }
 0x168   :  { %v209_v34 = vpop.permute.xlu2 %208 }
 0x178   :  { %v126_v25 = vpop.permute.xlu1 %125 }
 0x179   :  { %v127_v26 = vmul.f32 %v299_v8, %v126_v25 }
 0x17b   :  { %175 = vmatpush.msrb.mxu0 %v127_v26 }
 0x17c   :  { %285 = vmatmul.msk.f32.vlgmr.msrb.gmra.mxu0 %vm43_vm0, %v131_v27 }
 0x18b   :  { %v154_v30 = vpop.f32.mrf.mxu3  ;;  %v236_v39 = vpop.f32.mrf.mxu2 }
 0x1e1   :  { %v202_v32 = vpop.f32.mrf.mxu1 }
 0x1f9   :  { %v177_v31 = vpop.f32.mrf.mxu0 }
 0x1fa   :  { %v178_v33 = vadd.f32 %v177_v31, %v154_v30 }
 0x1fc   :  { %v205_v35 = vadd.f32 %v202_v32, %v178_v33 }
 0x1fe   :  { %v211_v36 = vadd.f32 %v209_v34, %v205_v35 }
 0x200   :  { %v212_v37 = vmax.f32 %v211_v36, 0.0 }
 0x202   :  { %257 = vmatpush.msrb.mxu3 %v212_v37 }
 0x203   :  { %290 = vmatmul.msk.f32.vlgmr.msrb.gmra.mxu3 %vm43_vm0, %v213_v38 }
 0x286   :  { %v259_v40 = vpop.f32.mrf.mxu3 }
 0x287   :  { %v260_v42 = vadd.f32 %v259_v40, %v236_v39 }
 0x289   :  { %v269_v43 = vadd.f32 %v267_v41, %v260_v42 }
 0x28b   :  { %v270_v44 = vmax.f32 %v269_v43, 0.0 }
 0x28d   :  { %271 = vst [vmem:[%s401_s6] sm:$0xff] %v270_v44 }

</bundles_post_ra>
